<compile_context>
chip_gen: v7x
topology: tpu7x:2x2x1
jax: 0.10.0
libtpu: 0.0.40
codegen_flags: <defaults>
</compile_context>

<pallas_src>
import jax
import jax.numpy as jnp
from jax.experimental import pallas as pl
from jax.experimental.pallas import tpu as pltpu


def _conv1x1_relu_sub_kernel(w_ref, b_ref, x_ref, o_ref):
    # w_ref: SMEM (Cout, Cin) f32, b_ref: SMEM (Cout,) f32
    # x_ref: VMEM (N, Cin, Hp, Wp) f32 (already zero-padded spatially)
    # o_ref: VMEM (N, Cout, Hp, Wp) f32
    n_batch, cin = x_ref.shape[0], x_ref.shape[1]
    cout = o_ref.shape[1]
    for n in range(n_batch):                 # static unroll: small batch
        # Hoist the Cin input slabs once; reuse across all Cout outputs.
        xs = [x_ref[n, c] for c in range(cin)]
        for o in range(cout):                # static unroll: Cout = 8
            acc = xs[0] * w_ref[o, 0]
            for c in range(1, cin):          # static unroll: Cin = 3 MACs (VPU)
                acc = acc + xs[c] * w_ref[o, c]
            o_ref[n, o] = jnp.maximum(acc + b_ref[o], 0.0) - 0.234


def conv1x1_relu_sub(x_nchw, weight, bias, *, padding=1):
    """1x1 conv (zeros padding) + ReLU + (.-0.234), NCHW in / NCHW out.

    x_nchw: (N, Cin, H, W); weight: (Cout, Cin); bias: (Cout,).
    Returns (N, Cout, H + 2*padding, W + 2*padding) float32.
    """
    n, cin, h, w = x_nchw.shape
    cout = weight.shape[0]
    hp, wp = h + 2 * padding, w + 2 * padding

    # Zero-pad spatially in the wrapper (this IS the conv's zero padding for a
    # 1x1 kernel); the Pallas kernel then emits the final output directly.
    x_pad = jnp.pad(
        x_nchw.astype(jnp.float32),
        ((0, 0), (0, 0), (padding, padding), (padding, padding)),
    )

    w2d = weight.astype(jnp.float32)   # (Cout, Cin) -> SMEM scalars
    b1d = bias.astype(jnp.float32)     # (Cout,)     -> SMEM scalars

    out = pl.pallas_call(
        _conv1x1_relu_sub_kernel,
        out_shape=jax.ShapeDtypeStruct((n, cout, hp, wp), jnp.float32),
        in_specs=[
            pl.BlockSpec(memory_space=pltpu.MemorySpace.SMEM),   # weight
            pl.BlockSpec(memory_space=pltpu.MemorySpace.SMEM),   # bias
            pl.BlockSpec(memory_space=pltpu.MemorySpace.VMEM),   # padded input
        ],
        out_specs=pl.BlockSpec(memory_space=pltpu.MemorySpace.VMEM),
    )(w2d, b1d, x_pad)
    return out


if __name__ == "__main__":
    key = jax.random.PRNGKey(0)
    kx, kw, kb = jax.random.split(key, 3)

    # Module-implied shapes: x (1, 3, 64, 64), Conv2d(3, 8, 1, padding=1)
    N, CIN, H, W = 1, 3, 64, 64
    COUT = 8

    x = jax.random.normal(kx, (N, CIN, H, W), dtype=jnp.float32)
    # Deterministic synthetic parameter init (uniform, bound 1/sqrt(fan_in))
    bound = 1.0 / jnp.sqrt(jnp.float32(CIN * 1 * 1))
    weight = jax.random.uniform(kw, (COUT, CIN), jnp.float32, -bound, bound)
    bias = jax.random.uniform(kb, (COUT,), jnp.float32, -bound, bound)

    out = conv1x1_relu_sub(x, weight, bias)
    out = jax.block_until_ready(out)

    # Reference in plain JAX: zero-padded 1x1 conv == padded channel matmul.
    x_ref_pad = jnp.pad(x, ((0, 0), (0, 0), (1, 1), (1, 1)))
    ref = jnp.einsum("nchw,oc->nohw", x_ref_pad, weight) + bias[None, :, None, None]
    ref = jnp.maximum(ref, 0.0) - 0.234

    assert out.shape == (N, COUT, H + 2, W + 2), out.shape
    assert jnp.allclose(out, ref, atol=1e-5, rtol=1e-5)
    print("KERNEL_OK")
</pallas_src>

<mosaic_0001>
module attributes {stable_mosaic.version = 11 : i64} {
  func.func @_conv1x1_relu_sub_kernel(%arg0: memref<8x3xf32, #tpu.memory_space<smem>>, %arg1: memref<8xf32, #tpu.memory_space<smem>>, %arg2: memref<1x3x66x66xf32, #tpu.memory_space<vmem>>, %arg3: memref<1x8x66x66xf32, #tpu.memory_space<vmem>>) attributes {dimension_semantics = [], scalar_prefetch = 0 : i64, scratch_operands = 0 : i64, tpu.core_type = #tpu.core_type<tc>} {
    %c0 = arith.constant 0 : index
    %c0_0 = arith.constant 0 : index
    %c0_1 = arith.constant 0 : index
    %c0_2 = arith.constant 0 : index
    %0 = vector.load %arg2[%c0, %c0_0, %c0_1, %c0_2] : memref<1x3x66x66xf32, #tpu.memory_space<vmem>>, vector<1x1x66x66xf32>
    %1 = vector.shape_cast %0 : vector<1x1x66x66xf32> to vector<66x66xf32>
    %c0_3 = arith.constant 0 : index
    %c1 = arith.constant 1 : index
    %c0_4 = arith.constant 0 : index
    %c0_5 = arith.constant 0 : index
    %2 = vector.load %arg2[%c0_3, %c1, %c0_4, %c0_5] : memref<1x3x66x66xf32, #tpu.memory_space<vmem>>, vector<1x1x66x66xf32>
    %3 = vector.shape_cast %2 : vector<1x1x66x66xf32> to vector<66x66xf32>
    %c0_6 = arith.constant 0 : index
    %c2 = arith.constant 2 : index
    %c0_7 = arith.constant 0 : index
    %c0_8 = arith.constant 0 : index
    %4 = vector.load %arg2[%c0_6, %c2, %c0_7, %c0_8] : memref<1x3x66x66xf32, #tpu.memory_space<vmem>>, vector<1x1x66x66xf32>
    %5 = vector.shape_cast %4 : vector<1x1x66x66xf32> to vector<66x66xf32>
    %c0_9 = arith.constant 0 : index
    %c0_10 = arith.constant 0 : index
    %6 = memref.load %arg0[%c0_9, %c0_10] : memref<8x3xf32, #tpu.memory_space<smem>>
    %7 = vector.broadcast %6 : f32 to vector<66x66xf32>
    %8 = arith.mulf %1, %7 : vector<66x66xf32>
    %c0_11 = arith.constant 0 : index
    %c1_12 = arith.constant 1 : index
    %9 = memref.load %arg0[%c0_11, %c1_12] : memref<8x3xf32, #tpu.memory_space<smem>>
    %10 = vector.broadcast %9 : f32 to vector<66x66xf32>
    %11 = arith.mulf %3, %10 : vector<66x66xf32>
    %12 = arith.addf %8, %11 : vector<66x66xf32>
    %c0_13 = arith.constant 0 : index
    %c2_14 = arith.constant 2 : index
    %13 = memref.load %arg0[%c0_13, %c2_14] : memref<8x3xf32, #tpu.memory_space<smem>>
    %14 = vector.broadcast %13 : f32 to vector<66x66xf32>
    %15 = arith.mulf %5, %14 : vector<66x66xf32>
    %16 = arith.addf %12, %15 : vector<66x66xf32>
    %c0_15 = arith.constant 0 : index
    %17 = memref.load %arg1[%c0_15] : memref<8xf32, #tpu.memory_space<smem>>
    %18 = vector.broadcast %17 : f32 to vector<66x66xf32>
    %19 = arith.addf %16, %18 : vector<66x66xf32>
    %cst = arith.constant 0.000000e+00 : f32
    %20 = vector.broadcast %cst : f32 to vector<66x66xf32>
    %21 = arith.maximumf %19, %20 : vector<66x66xf32>
    %cst_16 = arith.constant 2.340000e-01 : f32
    %22 = vector.broadcast %cst_16 : f32 to vector<66x66xf32>
    %23 = arith.subf %21, %22 : vector<66x66xf32>
    %c0_17 = arith.constant 0 : index
    %c0_18 = arith.constant 0 : index
    %c0_19 = arith.constant 0 : index
    %c0_20 = arith.constant 0 : index
    %24 = vector.load %arg3[%c0_17, %c0_18, %c0_19, %c0_20] : memref<1x8x66x66xf32, #tpu.memory_space<vmem>>, vector<1x1x66x66xf32>
    %25 = vector.shape_cast %24 : vector<1x1x66x66xf32> to vector<66x66xf32>
    %26 = vector.shape_cast %23 : vector<66x66xf32> to vector<1x1x66x66xf32>
    tpu.vector_store %arg3[%c0_17, %c0_18, %c0_19, %c0_20], %26 {strides = array<i32>} : memref<1x8x66x66xf32, #tpu.memory_space<vmem>>, vector<1x1x66x66xf32>,
    %c1_21 = arith.constant 1 : index
    %c0_22 = arith.constant 0 : index
    %27 = memref.load %arg0[%c1_21, %c0_22] : memref<8x3xf32, #tpu.memory_space<smem>>
    %28 = vector.broadcast %27 : f32 to vector<66x66xf32>
    %29 = arith.mulf %1, %28 : vector<66x66xf32>
    %c1_23 = arith.constant 1 : index
    %c1_24 = arith.constant 1 : index
    %30 = memref.load %arg0[%c1_23, %c1_24] : memref<8x3xf32, #tpu.memory_space<smem>>
    %31 = vector.broadcast %30 : f32 to vector<66x66xf32>
    %32 = arith.mulf %3, %31 : vector<66x66xf32>
    %33 = arith.addf %29, %32 : vector<66x66xf32>
    %c1_25 = arith.constant 1 : index
    %c2_26 = arith.constant 2 : index
    %34 = memref.load %arg0[%c1_25, %c2_26] : memref<8x3xf32, #tpu.memory_space<smem>>
    %35 = vector.broadcast %34 : f32 to vector<66x66xf32>
    %36 = arith.mulf %5, %35 : vector<66x66xf32>
    %37 = arith.addf %33, %36 : vector<66x66xf32>
    %c1_27 = arith.constant 1 : index
    %38 = memref.load %arg1[%c1_27] : memref<8xf32, #tpu.memory_space<smem>>
    %39 = vector.broadcast %38 : f32 to vector<66x66xf32>
    %40 = arith.addf %37, %39 : vector<66x66xf32>
    %cst_28 = arith.constant 0.000000e+00 : f32
    %41 = vector.broadcast %cst_28 : f32 to vector<66x66xf32>
    %42 = arith.maximumf %40, %41 : vector<66x66xf32>
    %cst_29 = arith.constant 2.340000e-01 : f32
    %43 = vector.broadcast %cst_29 : f32 to vector<66x66xf32>
    %44 = arith.subf %42, %43 : vector<66x66xf32>
    %c0_30 = arith.constant 0 : index
    %c1_31 = arith.constant 1 : index
    %c0_32 = arith.constant 0 : index
    %c0_33 = arith.constant 0 : index
    %45 = vector.load %arg3[%c0_30, %c1_31, %c0_32, %c0_33] : memref<1x8x66x66xf32, #tpu.memory_space<vmem>>, vector<1x1x66x66xf32>
    %46 = vector.shape_cast %45 : vector<1x1x66x66xf32> to vector<66x66xf32>
    %47 = vector.shape_cast %44 : vector<66x66xf32> to vector<1x1x66x66xf32>
    tpu.vector_store %arg3[%c0_30, %c1_31, %c0_32, %c0_33], %47 {strides = array<i32>} : memref<1x8x66x66xf32, #tpu.memory_space<vmem>>, vector<1x1x66x66xf32>,
    %c2_34 = arith.constant 2 : index
    %c0_35 = arith.constant 0 : index
    %48 = memref.load %arg0[%c2_34, %c0_35] : memref<8x3xf32, #tpu.memory_space<smem>>
    %49 = vector.broadcast %48 : f32 to vector<66x66xf32>
    %50 = arith.mulf %1, %49 : vector<66x66xf32>
    %c2_36 = arith.constant 2 : index
    %c1_37 = arith.constant 1 : index
    %51 = memref.load %arg0[%c2_36, %c1_37] : memref<8x3xf32, #tpu.memory_space<smem>>
    %52 = vector.broadcast %51 : f32 to vector<66x66xf32>
    %53 = arith.mulf %3, %52 : vector<66x66xf32>
    %54 = arith.addf %50, %53 : vector<66x66xf32>
    %c2_38 = arith.constant 2 : index
    %c2_39 = arith.constant 2 : index
    %55 = memref.load %arg0[%c2_38, %c2_39] : memref<8x3xf32, #tpu.memory_space<smem>>
    %56 = vector.broadcast %55 : f32 to vector<66x66xf32>
    %57 = arith.mulf %5, %56 : vector<66x66xf32>
    %58 = arith.addf %54, %57 : vector<66x66xf32>
    %c2_40 = arith.constant 2 : index
    %59 = memref.load %arg1[%c2_40] : memref<8xf32, #tpu.memory_space<smem>>
    %60 = vector.broadcast %59 : f32 to vector<66x66xf32>
    %61 = arith.addf %58, %60 : vector<66x66xf32>
    %cst_41 = arith.constant 0.000000e+00 : f32
    %62 = vector.broadcast %cst_41 : f32 to vector<66x66xf32>
    %63 = arith.maximumf %61, %62 : vector<66x66xf32>
    %cst_42 = arith.constant 2.340000e-01 : f32
    %64 = vector.broadcast %cst_42 : f32 to vector<66x66xf32>
    %65 = arith.subf %63, %64 : vector<66x66xf32>
    %c0_43 = arith.constant 0 : index
    %c2_44 = arith.constant 2 : index
    %c0_45 = arith.constant 0 : index
    %c0_46 = arith.constant 0 : index
    %66 = vector.load %arg3[%c0_43, %c2_44, %c0_45, %c0_46] : memref<1x8x66x66xf32, #tpu.memory_space<vmem>>, vector<1x1x66x66xf32>
    %67 = vector.shape_cast %66 : vector<1x1x66x66xf32> to vector<66x66xf32>
    %68 = vector.shape_cast %65 : vector<66x66xf32> to vector<1x1x66x66xf32>
    tpu.vector_store %arg3[%c0_43, %c2_44, %c0_45, %c0_46], %68 {strides = array<i32>} : memref<1x8x66x66xf32, #tpu.memory_space<vmem>>, vector<1x1x66x66xf32>,
    %c3 = arith.constant 3 : index
    %c0_47 = arith.constant 0 : index
    %69 = memref.load %arg0[%c3, %c0_47] : memref<8x3xf32, #tpu.memory_space<smem>>
    %70 = vector.broadcast %69 : f32 to vector<66x66xf32>
    %71 = arith.mulf %1, %70 : vector<66x66xf32>
    %c3_48 = arith.constant 3 : index
    %c1_49 = arith.constant 1 : index
    %72 = memref.load %arg0[%c3_48, %c1_49] : memref<8x3xf32, #tpu.memory_space<smem>>
    %73 = vector.broadcast %72 : f32 to vector<66x66xf32>
    %74 = arith.mulf %3, %73 : vector<66x66xf32>
    %75 = arith.addf %71, %74 : vector<66x66xf32>
    %c3_50 = arith.constant 3 : index
    %c2_51 = arith.constant 2 : index
    %76 = memref.load %arg0[%c3_50, %c2_51] : memref<8x3xf32, #tpu.memory_space<smem>>
    %77 = vector.broadcast %76 : f32 to vector<66x66xf32>
    %78 = arith.mulf %5, %77 : vector<66x66xf32>
    %79 = arith.addf %75, %78 : vector<66x66xf32>
    %c3_52 = arith.constant 3 : index
    %80 = memref.load %arg1[%c3_52] : memref<8xf32, #tpu.memory_space<smem>>
    %81 = vector.broadcast %80 : f32 to vector<66x66xf32>
    %82 = arith.addf %79, %81 : vector<66x66xf32>
    %cst_53 = arith.constant 0.000000e+00 : f32
    %83 = vector.broadcast %cst_53 : f32 to vector<66x66xf32>
    %84 = arith.maximumf %82, %83 : vector<66x66xf32>
    %cst_54 = arith.constant 2.340000e-01 : f32
    %85 = vector.broadcast %cst_54 : f32 to vector<66x66xf32>
    %86 = arith.subf %84, %85 : vector<66x66xf32>
    %c0_55 = arith.constant 0 : index
    %c3_56 = arith.constant 3 : index
    %c0_57 = arith.constant 0 : index
    %c0_58 = arith.constant 0 : index
    %87 = vector.load %arg3[%c0_55, %c3_56, %c0_57, %c0_58] : memref<1x8x66x66xf32, #tpu.memory_space<vmem>>, vector<1x1x66x66xf32>
    %88 = vector.shape_cast %87 : vector<1x1x66x66xf32> to vector<66x66xf32>
    %89 = vector.shape_cast %86 : vector<66x66xf32> to vector<1x1x66x66xf32>
    tpu.vector_store %arg3[%c0_55, %c3_56, %c0_57, %c0_58], %89 {strides = array<i32>} : memref<1x8x66x66xf32, #tpu.memory_space<vmem>>, vector<1x1x66x66xf32>,
    %c4 = arith.constant 4 : index
    %c0_59 = arith.constant 0 : index
    %90 = memref.load %arg0[%c4, %c0_59] : memref<8x3xf32, #tpu.memory_space<smem>>
    %91 = vector.broadcast %90 : f32 to vector<66x66xf32>
    %92 = arith.mulf %1, %91 : vector<66x66xf32>
    %c4_60 = arith.constant 4 : index
    %c1_61 = arith.constant 1 : index
    %93 = memref.load %arg0[%c4_60, %c1_61] : memref<8x3xf32, #tpu.memory_space<smem>>
    %94 = vector.broadcast %93 : f32 to vector<66x66xf32>
    %95 = arith.mulf %3, %94 : vector<66x66xf32>
    %96 = arith.addf %92, %95 : vector<66x66xf32>
    %c4_62 = arith.constant 4 : index
    %c2_63 = arith.constant 2 : index
    %97 = memref.load %arg0[%c4_62, %c2_63] : memref<8x3xf32, #tpu.memory_space<smem>>
    %98 = vector.broadcast %97 : f32 to vector<66x66xf32>
    %99 = arith.mulf %5, %98 : vector<66x66xf32>
    %100 = arith.addf %96, %99 : vector<66x66xf32>
    %c4_64 = arith.constant 4 : index
    %101 = memref.load %arg1[%c4_64] : memref<8xf32, #tpu.memory_space<smem>>
    %102 = vector.broadcast %101 : f32 to vector<66x66xf32>
    %103 = arith.addf %100, %102 : vector<66x66xf32>
    %cst_65 = arith.constant 0.000000e+00 : f32
    %104 = vector.broadcast %cst_65 : f32 to vector<66x66xf32>
    %105 = arith.maximumf %103, %104 : vector<66x66xf32>
    %cst_66 = arith.constant 2.340000e-01 : f32
    %106 = vector.broadcast %cst_66 : f32 to vector<66x66xf32>
    %107 = arith.subf %105, %106 : vector<66x66xf32>
    %c0_67 = arith.constant 0 : index
    %c4_68 = arith.constant 4 : index
    %c0_69 = arith.constant 0 : index
    %c0_70 = arith.constant 0 : index
    %108 = vector.load %arg3[%c0_67, %c4_68, %c0_69, %c0_70] : memref<1x8x66x66xf32, #tpu.memory_space<vmem>>, vector<1x1x66x66xf32>
    %109 = vector.shape_cast %108 : vector<1x1x66x66xf32> to vector<66x66xf32>
    %110 = vector.shape_cast %107 : vector<66x66xf32> to vector<1x1x66x66xf32>
    tpu.vector_store %arg3[%c0_67, %c4_68, %c0_69, %c0_70], %110 {strides = array<i32>} : memref<1x8x66x66xf32, #tpu.memory_space<vmem>>, vector<1x1x66x66xf32>,
    %c5 = arith.constant 5 : index
    %c0_71 = arith.constant 0 : index
    %111 = memref.load %arg0[%c5, %c0_71] : memref<8x3xf32, #tpu.memory_space<smem>>
    %112 = vector.broadcast %111 : f32 to vector<66x66xf32>
    %113 = arith.mulf %1, %112 : vector<66x66xf32>
    %c5_72 = arith.constant 5 : index
    %c1_73 = arith.constant 1 : index
    %114 = memref.load %arg0[%c5_72, %c1_73] : memref<8x3xf32, #tpu.memory_space<smem>>
    %115 = vector.broadcast %114 : f32 to vector<66x66xf32>
    %116 = arith.mulf %3, %115 : vector<66x66xf32>
    %117 = arith.addf %113, %116 : vector<66x66xf32>
    %c5_74 = arith.constant 5 : index
    %c2_75 = arith.constant 2 : index
    %118 = memref.load %arg0[%c5_74, %c2_75] : memref<8x3xf32, #tpu.memory_space<smem>>
    %119 = vector.broadcast %118 : f32 to vector<66x66xf32>
    %120 = arith.mulf %5, %119 : vector<66x66xf32>
    %121 = arith.addf %117, %120 : vector<66x66xf32>
    %c5_76 = arith.constant 5 : index
    %122 = memref.load %arg1[%c5_76] : memref<8xf32, #tpu.memory_space<smem>>
    %123 = vector.broadcast %122 : f32 to vector<66x66xf32>
    %124 = arith.addf %121, %123 : vector<66x66xf32>
    %cst_77 = arith.constant 0.000000e+00 : f32
    %125 = vector.broadcast %cst_77 : f32 to vector<66x66xf32>
    %126 = arith.maximumf %124, %125 : vector<66x66xf32>
    %cst_78 = arith.constant 2.340000e-01 : f32
    %127 = vector.broadcast %cst_78 : f32 to vector<66x66xf32>
    %128 = arith.subf %126, %127 : vector<66x66xf32>
    %c0_79 = arith.constant 0 : index
    %c5_80 = arith.constant 5 : index
    %c0_81 = arith.constant 0 : index
    %c0_82 = arith.constant 0 : index
    %129 = vector.load %arg3[%c0_79, %c5_80, %c0_81, %c0_82] : memref<1x8x66x66xf32, #tpu.memory_space<vmem>>, vector<1x1x66x66xf32>
    %130 = vector.shape_cast %129 : vector<1x1x66x66xf32> to vector<66x66xf32>
    %131 = vector.shape_cast %128 : vector<66x66xf32> to vector<1x1x66x66xf32>
    tpu.vector_store %arg3[%c0_79, %c5_80, %c0_81, %c0_82], %131 {strides = array<i32>} : memref<1x8x66x66xf32, #tpu.memory_space<vmem>>, vector<1x1x66x66xf32>,
    %c6 = arith.constant 6 : index
    %c0_83 = arith.constant 0 : index
    %132 = memref.load %arg0[%c6, %c0_83] : memref<8x3xf32, #tpu.memory_space<smem>>
    %133 = vector.broadcast %132 : f32 to vector<66x66xf32>
    %134 = arith.mulf %1, %133 : vector<66x66xf32>
    %c6_84 = arith.constant 6 : index
    %c1_85 = arith.constant 1 : index
    %135 = memref.load %arg0[%c6_84, %c1_85] : memref<8x3xf32, #tpu.memory_space<smem>>
    %136 = vector.broadcast %135 : f32 to vector<66x66xf32>
    %137 = arith.mulf %3, %136 : vector<66x66xf32>
    %138 = arith.addf %134, %137 : vector<66x66xf32>
    %c6_86 = arith.constant 6 : index
    %c2_87 = arith.constant 2 : index
    %139 = memref.load %arg0[%c6_86, %c2_87] : memref<8x3xf32, #tpu.memory_space<smem>>
    %140 = vector.broadcast %139 : f32 to vector<66x66xf32>
    %141 = arith.mulf %5, %140 : vector<66x66xf32>
    %142 = arith.addf %138, %141 : vector<66x66xf32>
    %c6_88 = arith.constant 6 : index
    %143 = memref.load %arg1[%c6_88] : memref<8xf32, #tpu.memory_space<smem>>
    %144 = vector.broadcast %143 : f32 to vector<66x66xf32>
    %145 = arith.addf %142, %144 : vector<66x66xf32>
    %cst_89 = arith.constant 0.000000e+00 : f32
    %146 = vector.broadcast %cst_89 : f32 to vector<66x66xf32>
    %147 = arith.maximumf %145, %146 : vector<66x66xf32>
    %cst_90 = arith.constant 2.340000e-01 : f32
    %148 = vector.broadcast %cst_90 : f32 to vector<66x66xf32>
    %149 = arith.subf %147, %148 : vector<66x66xf32>
    %c0_91 = arith.constant 0 : index
    %c6_92 = arith.constant 6 : index
    %c0_93 = arith.constant 0 : index
    %c0_94 = arith.constant 0 : index
    %150 = vector.load %arg3[%c0_91, %c6_92, %c0_93, %c0_94] : memref<1x8x66x66xf32, #tpu.memory_space<vmem>>, vector<1x1x66x66xf32>
    %151 = vector.shape_cast %150 : vector<1x1x66x66xf32> to vector<66x66xf32>
    %152 = vector.shape_cast %149 : vector<66x66xf32> to vector<1x1x66x66xf32>
    tpu.vector_store %arg3[%c0_91, %c6_92, %c0_93, %c0_94], %152 {strides = array<i32>} : memref<1x8x66x66xf32, #tpu.memory_space<vmem>>, vector<1x1x66x66xf32>,
    %c7 = arith.constant 7 : index
    %c0_95 = arith.constant 0 : index
    %153 = memref.load %arg0[%c7, %c0_95] : memref<8x3xf32, #tpu.memory_space<smem>>
    %154 = vector.broadcast %153 : f32 to vector<66x66xf32>
    %155 = arith.mulf %1, %154 : vector<66x66xf32>
    %c7_96 = arith.constant 7 : index
    %c1_97 = arith.constant 1 : index
    %156 = memref.load %arg0[%c7_96, %c1_97] : memref<8x3xf32, #tpu.memory_space<smem>>
    %157 = vector.broadcast %156 : f32 to vector<66x66xf32>
    %158 = arith.mulf %3, %157 : vector<66x66xf32>
    %159 = arith.addf %155, %158 : vector<66x66xf32>
    %c7_98 = arith.constant 7 : index
    %c2_99 = arith.constant 2 : index
    %160 = memref.load %arg0[%c7_98, %c2_99] : memref<8x3xf32, #tpu.memory_space<smem>>
    %161 = vector.broadcast %160 : f32 to vector<66x66xf32>
    %162 = arith.mulf %5, %161 : vector<66x66xf32>
    %163 = arith.addf %159, %162 : vector<66x66xf32>
    %c7_100 = arith.constant 7 : index
    %164 = memref.load %arg1[%c7_100] : memref<8xf32, #tpu.memory_space<smem>>
    %165 = vector.broadcast %164 : f32 to vector<66x66xf32>
    %166 = arith.addf %163, %165 : vector<66x66xf32>
    %cst_101 = arith.constant 0.000000e+00 : f32
    %167 = vector.broadcast %cst_101 : f32 to vector<66x66xf32>
    %168 = arith.maximumf %166, %167 : vector<66x66xf32>
    %cst_102 = arith.constant 2.340000e-01 : f32
    %169 = vector.broadcast %cst_102 : f32 to vector<66x66xf32>
    %170 = arith.subf %168, %169 : vector<66x66xf32>
    %c0_103 = arith.constant 0 : index
    %c7_104 = arith.constant 7 : index
    %c0_105 = arith.constant 0 : index
    %c0_106 = arith.constant 0 : index
    %171 = vector.load %arg3[%c0_103, %c7_104, %c0_105, %c0_106] : memref<1x8x66x66xf32, #tpu.memory_space<vmem>>, vector<1x1x66x66xf32>
    %172 = vector.shape_cast %171 : vector<1x1x66x66xf32> to vector<66x66xf32>
    %173 = vector.shape_cast %170 : vector<66x66xf32> to vector<1x1x66x66xf32>
    tpu.vector_store %arg3[%c0_103, %c7_104, %c0_105, %c0_106], %173 {strides = array<i32>} : memref<1x8x66x66xf32, #tpu.memory_space<vmem>>, vector<1x1x66x66xf32>,
    return
  }
}

</mosaic_0001>

<bundles_post_ra>
// kernel: tpu_custom_call.1
= control target key start
LH: loop header
LB: loop body
LE: loop exit
PB: predicated region body
PF: predicated region fallthrough
CT: control target
= control target key end

     0   :  { %8 = vsyncpa [#allocation3], 0  ;;  %s2273_s0 = inlined_call_operand.vmem [shape: f32[8,3], index: 0, kind: input, shape index: {}]   ;;  %s2274_s1 = inlined_call_operand.vmem [shape: f32[8], index: 1, kind: input, shape index: {}]   ;;  %s2275_s2 = inlined_call_operand.vmem [shape: f32[1,3,66,66], index: 2, kind: input, shape index: {}]   ;;  %s2276_s3 = inlined_call_operand.vmem [shape: f32[1,8,66,66], index: 3, kind: output, shape index: {}]  }
   0x1   :  { %s16_s14 = sshll.u32 %s2273_s0, 4  ;;  %s17_s14 = int_to_ptr.vmem [resolvable:$true] %s16_s14 }
   0x2   :  { %9 = vsyncpa [#allocation5], 0  ;;  %s26_s17 = sshll.u32 %s2274_s1, 4  ;;  %s1007_s18 = scalar_lea.vmem %s17_s14, 128  ;;  %s27_s17 = int_to_ptr.vmem [resolvable:$true] %s26_s17 }
   0x3   :  { %p1008_p0 = scmp.ne.s32.totalorder %s17_s14, %s1007_s18  ;;  %p1012_p1 = scmp.lt.s32.totalorder %s17_s14, %s17_s14 }
   0x4   :  { %p1013_p2 = scmp.lt.s32.totalorder %s1007_s18, %s1007_s18 }
   0x6   :  { %p1014_p3 = por %p1013_p2, %p1012_p1 }
   0x8   :  { %p1015_p4 = pnand %p1014_p3, %p1008_p0 }
   0xa   :  { %1018 = shalt.err (!%p1015_p4)
}
   0xb   :  { %s1035_s19 = smov [#allocation2]   ;;  %s1019_s20 = scalar_lea.vmem %s27_s17, 16 }
   0xc   :  { %19 = dma.vmem_to_smem %s17_s14, 128, %s1035_s19, [#allocation3]  }
   0xd   :  { %p1020_p5 = scmp.ne.s32.totalorder %s27_s17, %s1019_s20  ;;  %p1024_p6 = scmp.lt.s32.totalorder %s27_s17, %s27_s17 }
   0xe   :  { %p1025_p7 = scmp.lt.s32.totalorder %s1019_s20, %s1019_s20 }
  0x10   :  { %p1026_p8 = por %p1025_p7, %p1024_p6 }
  0x12   :  { %p1027_p9 = pnand %p1026_p8, %p1020_p5 }
  0x14   :  { %1030 = shalt.err (!%p1027_p9)
}
  0x15   :  { %s1036_s0 = smov [#allocation4]  }
  0x16   :  { %29 = dma.vmem_to_smem %s27_s17, 16, %s1036_s0, [#allocation5]  }
  0x17   :  { %1031 = dma.done.wait [#allocation3], 128  }
  0x18   :  { %1032 = vsyncadd [#allocation3], 4294967168 }
  0x19   :  { %1033 = dma.done.wait [#allocation5], 16  }
  0x1a   :  { %1034 = vsyncadd [#allocation5], 4294967280 }
  0x1b   :  { %38 = sfence }
  0x1c   :  { %s68_s1 = sld [smem:[#allocation2]]  ;;  %s813_s21 = sld [smem:[#allocation2 + $0x1]]  ;;  %v1066_v0 = vld [vmem:[%s2275_s2] sm:$0xff]  ;;  %v1071_v1 = vld [vmem:[%s2275_s2 + $0x48] sm:$0xff]  ;;  %v1081_v3 = vld [vmem:[%s2275_s2 + $0x90] sm:$0xff]  ;;  %vm148_vm0 = vcmask 539648  }
  0x1d   :  { %s814_s22 = sld [smem:[#allocation2 + $0x2]]  ;;  %s119_s23 = sld [smem:[#allocation4]]  ;;  %v1076_v2 = vld [vmem:[%s2275_s2 + $0x8] sm:$0xff]  ;;  %v1086_v4 = vld [vmem:[%s2275_s2 + $0x50] sm:$0xff]  ;;  %v1091_v5 = vld [vmem:[%s2275_s2 + $0x98] sm:$0xff]  ;;  %vm157_vm1 = vcmask 533504  }
  0x1e   :  { %v1098_v7 = vld [vmem:[%s2275_s2 + $0x10] sm:$0xff]  ;;  %v1103_v8 = vld [vmem:[%s2275_s2 + $0x58] sm:$0xff]  ;;  %v1108_v9 = vld [vmem:[%s2275_s2 + $0xa0] sm:$0xff]  ;;  %s1214_s10 = sld [smem:[#allocation2 + $0x80]]  ;;  %s1219_s11 = sld [smem:[#allocation2 + $0x81]] }
  0x1f   :  { %v1121_v14 = vld [vmem:[%s2275_s2 + $0x18] sm:$0xff]  ;;  %v1126_v15 = vld [vmem:[%s2275_s2 + $0x60] sm:$0xff]  ;;  %v1139_v20 = vld [vmem:[%s2275_s2 + $0xa8] sm:$0xff]  ;;  %s1221_s12 = sld [smem:[#allocation2 + $0x82]]  ;;  %s1236_s17 = sld [smem:[#allocation4 + $0x1]] }
  0x20   :  { %v1144_v21 = vld [vmem:[%s2275_s2 + $0x20] sm:$0xff]  ;;  %v1149_v22 = vld [vmem:[%s2275_s2 + $0x68] sm:$0xff]  ;;  %v1162_v27 = vld [vmem:[%s2275_s2 + $0xb0] sm:$0xff]  ;;  %s1362_s15 = sld [smem:[#allocation2 + $0x100]]  ;;  %s1364_s16 = sld [smem:[#allocation2 + $0x101]] }
  0x21   :  { %v1171_v32 = vld [vmem:[%s2275_s2 + $0x28] sm:$0xff]  ;;  %v1176_v33 = vld [vmem:[%s2275_s2 + $0x70] sm:$0xff]  ;;  %v1187_v38 = vld [vmem:[%s2275_s2 + $0xb8] sm:$0xff]  ;;  %s1381_s20 = sld [smem:[#allocation4 + $0x2]]  ;;  %s1480_s8 = sld [smem:[#allocation2 + $0x180]] }
  0x22   :  { %v1093_v6 = vstv %s68_s1  ;;  %v1112_v11 = vstv %s813_s21  ;;  %v1194_v43 = vld [vmem:[%s2275_s2 + $0x30] sm:$0xff]  ;;  %v1203_v48 = vld [vmem:[%s2275_s2 + $0x78] sm:$0xff]  ;;  %s1482_s9 = sld [smem:[#allocation2 + $0x181]]  ;;  %s1599_s28 = sld [smem:[#allocation2 + $0x200]] }
  0x23   :  { %v70_v10 = vmul.f32 %v1093_v6, %v1066_v0  ;;  %v1114_v12 = vstv %s814_s22  ;;  %v71_v13 = vmul.f32 %v1093_v6, %v1076_v2  ;;  %v81_v16 = vmul.f32 %v1071_v1, %v1112_v11  ;;  %v1212_v53 = vld [vmem:[%s2275_s2 + $0xc0] sm:$0xff]  ;;  %v1229_v62 = vld [vmem:[%s2275_s2 + $0x38] sm:$0xff]  ;;  %s1601_s29 = sld [smem:[#allocation2 + $0x201]]  ;;  %s1609_s30 = sld [smem:[#allocation2 + $0x202]] }
  0x24   :  { %v101_v17 = vmul.f32 %v1081_v3, %v1114_v12  ;;  %v1132_v18 = vstv %s119_s23  ;;  %v82_v19 = vmul.f32 %v1086_v4, %v1112_v11  ;;  %v102_v23 = vmul.f32 %v1091_v5, %v1114_v12  ;;  %v1234_v63 = vld [vmem:[%s2275_s2 + $0x80] sm:$0xff]  ;;  %s1611_s4 = sld [smem:[#allocation4 + $0x4]]  ;;  %s1718_s21 = sld [smem:[#allocation2 + $0x280]] }
  0x25   :  { %v72_v24 = vmul.f32 %v1093_v6, %v1098_v7  ;;  %v83_v25 = vmul.f32 %v1103_v8, %v1112_v11  ;;  %v103_v26 = vmul.f32 %v1108_v9, %v1114_v12  ;;  %v90_v28 = vadd.f32 %v81_v16, %v70_v10  ;;  %s1720_s22 = sld [smem:[#allocation2 + $0x281]]  ;;  %s1728_s23 = sld [smem:[#allocation2 + $0x282]] }
  0x26   :  { %v91_v29 = vadd.f32 %v82_v19, %v71_v13  ;;  %v73_v30 = vmul.f32 %v1093_v6, %v1121_v14  ;;  %v84_v31 = vmul.f32 %v1126_v15, %v1112_v11  ;;  %v104_v35 = vmul.f32 %v1139_v20, %v1114_v12  ;;  %v1244_v19 = vld [vmem:[%s2275_s2 + $0xc8] sm:$0xff]  ;;  %s1730_s24 = sld [smem:[#allocation4 + $0x5]]  ;;  %s1847_s18 = sld [smem:[#allocation2 + $0x302]] }
  0x27   :  { %v92_v34 = vadd.f32 %v83_v25, %v72_v24  ;;  %v74_v36 = vmul.f32 %v1093_v6, %v1144_v21  ;;  %v85_v37 = vmul.f32 %v1149_v22, %v1112_v11  ;;  %v110_v39 = vadd.f32 %v101_v17, %v90_v28  ;;  %v1254_v24 = vld [vmem:[%s2275_s2 + $0x88] sm:$0x3]  ;;  %s1849_s19 = sld [smem:[#allocation4 + $0x6]]  ;;  %s2041_s14 = sld [smem:[#allocation2 + $0x380]] }
  0x28   :  { %v111_v40 = vadd.f32 %v102_v23, %v91_v29  ;;  %v93_v41 = vadd.f32 %v84_v31, %v73_v30  ;;  %v105_v42 = vmul.f32 %v1162_v27, %v1114_v12  ;;  %v75_v46 = vmul.f32 %v1093_v6, %v1171_v32  ;;  %v1249_v23 = vld [vmem:[%s2275_s2 + $0x40] sm:$0x3]  ;;  %s2063_s0 = sld [smem:[#allocation4 + $0x7]] }
  0x29   :  { %v112_v44 = vadd.f32 %v103_v26, %v92_v34  ;;  %v94_v45 = vadd.f32 %v85_v37, %v74_v36  ;;  %v86_v47 = vmul.f32 %v1176_v33, %v1112_v11  ;;  %v121_v49 = vadd.f32 %v1132_v18, %v110_v39  ;;  %v1262_v36 = vld [vmem:[%s2275_s2 + $0xd0] sm:$0x3] }
  0x2a   :  { %v122_v50 = vadd.f32 %v1132_v18, %v111_v40  ;;  %v113_v51 = vadd.f32 %v104_v35, %v93_v41  ;;  %v106_v52 = vmul.f32 %v1187_v38, %v1114_v12  ;;  %v76_v57 = vmul.f32 %v1093_v6, %v1194_v43 }
  0x2b   :  { %v123_v54 = vadd.f32 %v1132_v18, %v112_v44  ;;  %v114_v55 = vadd.f32 %v105_v42, %v94_v45  ;;  %v95_v56 = vadd.f32 %v86_v47, %v75_v46  ;;  %v130_v58 = vmax.f32 %v121_v49, 0.0 }
  0x2c   :  { %v131_v59 = vmax.f32 %v122_v50, 0.0  ;;  %v124_v60 = vadd.f32 %v1132_v18, %v113_v51  ;;  %v87_v61 = vmul.f32 %v1203_v48, %v1112_v11  ;;  %v107_v17 = vmul.f32 %v1212_v53, %v1114_v12 }
  0x2d   :  { %v132_v10 = vmax.f32 %v123_v54, 0.0  ;;  %v125_v13 = vadd.f32 %v1132_v18, %v114_v55  ;;  %v115_v16 = vadd.f32 %v106_v52, %v95_v56  ;;  %v815_v25 = vadd.f32 -0.234, %v130_v58 }
  0x2e   :  { %v816_v26 = vadd.f32 -0.234, %v131_v59  ;;  %v133_v28 = vmax.f32 %v124_v60, 0.0  ;;  %v96_v29 = vadd.f32 %v87_v61, %v76_v57  ;;  %v77_v35 = vmul.f32 %v1093_v6, %v1229_v62 }
  0x2f   :  { %v817_v30 = vadd.f32 -0.234, %v132_v10  ;;  %v134_v31 = vmax.f32 %v125_v13, 0.0  ;;  %v126_v34 = vadd.f32 %v1132_v18, %v115_v16  ;;  %149 = vst.msk [vmem:[%s2276_s3] sm:$0xff] %vm148_vm0, %v815_v25  ;;  %v88_v40 = vmul.f32 %v1234_v63, %v1112_v11 }
  0x30   :  { %150 = vst.msk [vmem:[%s2276_s3 + $0x8] sm:$0xff] %vm148_vm0, %v816_v26  ;;  %v818_v37 = vadd.f32 -0.234, %v133_v28  ;;  %v116_v39 = vadd.f32 %v107_v17, %v96_v29  ;;  %v108_v41 = vmul.f32 %v1244_v19, %v1114_v12  ;;  %v78_v45 = vmul.f32 %v1093_v6, %v1249_v23 }
  0x31   :  { %151 = vst.msk [vmem:[%s2276_s3 + $0x10] sm:$0xff] %vm148_vm0, %v817_v30  ;;  %v819_v42 = vadd.f32 -0.234, %v134_v31  ;;  %v135_v44 = vmax.f32 %v126_v34, 0.0  ;;  %v89_v46 = vmul.f32 %v1254_v24, %v1112_v11  ;;  %v97_v49 = vadd.f32 %v88_v40, %v77_v35 }
  0x32   :  { %152 = vst.msk [vmem:[%s2276_s3 + $0x18] sm:$0xff] %vm148_vm0, %v818_v37  ;;  %v127_v47 = vadd.f32 %v1132_v18, %v116_v39  ;;  %v109_v50 = vmul.f32 %v1262_v36, %v1114_v12  ;;  %v1292_v51 = vstv %s1214_s10  ;;  %v1301_v54 = vstv %s1219_s11  ;;  %s1490_s10 = sld [smem:[#allocation2 + $0x182]]  ;;  %s1492_s11 = sld [smem:[#allocation4 + $0x3]] }
  0x33   :  { %153 = vst.msk [vmem:[%s2276_s3 + $0x20] sm:$0xff] %vm148_vm0, %v819_v42  ;;  %v820_v6 = vadd.f32 -0.234, %v135_v44  ;;  %v98_v11 = vadd.f32 %v89_v46, %v78_v45  ;;  %v161_v52 = vmul.f32 %v1292_v51, %v1066_v0  ;;  %v117_v56 = vadd.f32 %v108_v41, %v97_v49 }
  0x34   :  { %v136_v55 = vmax.f32 %v127_v47, 0.0  ;;  %v172_v12 = vmul.f32 %v1071_v1, %v1301_v54  ;;  %v1306_v57 = vstv %s1221_s12  ;;  %v1315_v60 = vstv %s1236_s17  ;;  %s1371_s17 = sld [smem:[#allocation2 + $0x102]] }
  0x35   :  { %154 = vst.msk [vmem:[%s2276_s3 + $0x28] sm:$0xff] %vm148_vm0, %v820_v6  ;;  %v118_v58 = vadd.f32 %v109_v50, %v98_v11  ;;  %v192_v59 = vmul.f32 %v1081_v3, %v1306_v57  ;;  %v162_v61 = vmul.f32 %v1292_v51, %v1076_v2  ;;  %v128_v13 = vadd.f32 %v1132_v18, %v117_v56 }
  0x36   :  { %v821_v10 = vadd.f32 -0.234, %v136_v55  ;;  %v181_v16 = vadd.f32 %v172_v12, %v161_v52  ;;  %v173_v17 = vmul.f32 %v1086_v4, %v1301_v54  ;;  %v193_v26 = vmul.f32 %v1091_v5, %v1306_v57 }
  0x37   :  { %v129_v25 = vadd.f32 %v1132_v18, %v118_v58  ;;  %v163_v28 = vmul.f32 %v1292_v51, %v1098_v7  ;;  %v174_v29 = vmul.f32 %v1103_v8, %v1301_v54  ;;  %v137_v30 = vmax.f32 %v128_v13, 0.0 }
  0x38   :  { %155 = vst.msk [vmem:[%s2276_s3 + $0x30] sm:$0xff] %vm148_vm0, %v821_v10  ;;  %v201_v31 = vadd.f32 %v192_v59, %v181_v16  ;;  %v182_v34 = vadd.f32 %v173_v17, %v162_v61  ;;  %v194_v18 = vmul.f32 %v1108_v9, %v1306_v57  ;;  %v164_v39 = vmul.f32 %v1292_v51, %v1121_v14 }
  0x39   :  { %v138_v35 = vmax.f32 %v129_v25, 0.0  ;;  %v183_v37 = vadd.f32 %v174_v29, %v163_v28  ;;  %v175_v40 = vmul.f32 %v1126_v15, %v1301_v54  ;;  %v822_v41 = vadd.f32 -0.234, %v137_v30 }
  0x3a   :  { %v212_v42 = vadd.f32 %v1315_v60, %v201_v31  ;;  %v202_v44 = vadd.f32 %v193_v26, %v182_v34  ;;  %v195_v45 = vmul.f32 %v1139_v20, %v1306_v57  ;;  %v165_v50 = vmul.f32 %v1292_v51, %v1144_v21 }
  0x3b   :  { %v823_v46 = vadd.f32 -0.234, %v138_v35  ;;  %v203_v47 = vadd.f32 %v194_v18, %v183_v37  ;;  %v184_v49 = vadd.f32 %v175_v40, %v164_v39  ;;  %156 = vst.msk [vmem:[%s2276_s3 + $0x38] sm:$0xff] %vm148_vm0, %v822_v41  ;;  %v176_v52 = vmul.f32 %v1149_v22, %v1301_v54 }
  0x3c   :  { %v221_v6 = vmax.f32 %v212_v42, 0.0  ;;  %v213_v11 = vadd.f32 %v1315_v60, %v202_v44  ;;  %v196_v55 = vmul.f32 %v1162_v27, %v1306_v57  ;;  %v166_v58 = vmul.f32 %v1292_v51, %v1171_v32 }
  0x3d   :  { %158 = vst.msk [vmem:[%s2276_s3 + $0x40] sm:$0x3] %vm157_vm1, %v823_v46  ;;  %v214_v56 = vadd.f32 %v1315_v60, %v203_v47  ;;  %v204_v12 = vadd.f32 %v195_v45, %v184_v49  ;;  %v177_v59 = vmul.f32 %v1176_v33, %v1301_v54  ;;  %v185_v13 = vadd.f32 %v176_v52, %v165_v50 }
  0x3e   :  { %v828_v61 = vadd.f32 -0.234, %v221_v6  ;;  %v222_v10 = vmax.f32 %v213_v11, 0.0  ;;  %v197_v16 = vmul.f32 %v1187_v38, %v1306_v57  ;;  %v167_v28 = vmul.f32 %v1292_v51, %v1194_v43 }
  0x3f   :  { %v223_v17 = vmax.f32 %v214_v56, 0.0  ;;  %v215_v25 = vadd.f32 %v1315_v60, %v204_v12  ;;  %v186_v26 = vadd.f32 %v177_v59, %v166_v58  ;;  %v205_v30 = vadd.f32 %v196_v55, %v185_v13 }
  0x40   :  { %837 = vst.msk [vmem:[%s2276_s3 + $0x48] sm:$0xff] %vm148_vm0, %v828_v61  ;;  %v829_v29 = vadd.f32 -0.234, %v222_v10  ;;  %v178_v31 = vmul.f32 %v1203_v48, %v1301_v54  ;;  %v198_v34 = vmul.f32 %v1212_v53, %v1306_v57  ;;  %v168_v39 = vmul.f32 %v1292_v51, %v1229_v62 }
  0x41   :  { %v830_v18 = vadd.f32 -0.234, %v223_v17  ;;  %v224_v35 = vmax.f32 %v215_v25, 0.0  ;;  %v206_v37 = vadd.f32 %v197_v16, %v186_v26  ;;  %v216_v40 = vadd.f32 %v1315_v60, %v205_v30 }
  0x42   :  { %838 = vst.msk [vmem:[%s2276_s3 + $0x50] sm:$0xff] %vm148_vm0, %v829_v29  ;;  %v187_v41 = vadd.f32 %v178_v31, %v167_v28  ;;  %v179_v42 = vmul.f32 %v1234_v63, %v1301_v54  ;;  %v199_v44 = vmul.f32 %v1244_v19, %v1306_v57  ;;  %v169_v47 = vmul.f32 %v1292_v51, %v1249_v23 }
  0x43   :  { %839 = vst.msk [vmem:[%s2276_s3 + $0x58] sm:$0xff] %vm148_vm0, %v830_v18  ;;  %v831_v45 = vadd.f32 -0.234, %v224_v35  ;;  %v217_v46 = vadd.f32 %v1315_v60, %v206_v37  ;;  %v180_v49 = vmul.f32 %v1254_v24, %v1301_v54  ;;  %v225_v50 = vmax.f32 %v216_v40, 0.0 }
  0x44   :  { %v207_v6 = vadd.f32 %v198_v34, %v187_v41  ;;  %v188_v11 = vadd.f32 %v179_v42, %v168_v39  ;;  %v200_v52 = vmul.f32 %v1262_v36, %v1306_v57  ;;  %v1410_v12 = vstv %s1362_s15  ;;  %s2043_s15 = sld [smem:[#allocation2 + $0x381]] }
  0x45   :  { %840 = vst.msk [vmem:[%s2276_s3 + $0x60] sm:$0xff] %vm148_vm0, %v831_v45  ;;  %v226_v55 = vmax.f32 %v217_v46, 0.0  ;;  %v189_v56 = vadd.f32 %v180_v49, %v169_v47  ;;  %v1413_v51 = vstv %s1364_s16  ;;  %v832_v54 = vadd.f32 -0.234, %v225_v50  ;;  %s1837_s16 = sld [smem:[#allocation2 + $0x300]] }
  0x46   :  { %v218_v58 = vadd.f32 %v1315_v60, %v207_v6  ;;  %v208_v59 = vadd.f32 %v199_v44, %v188_v11  ;;  %v251_v61 = vmul.f32 %v1410_v12, %v1066_v0  ;;  %v262_v13 = vmul.f32 %v1071_v1, %v1413_v51 }
  0x47   :  { %v833_v57 = vadd.f32 -0.234, %v226_v55  ;;  %v209_v10 = vadd.f32 %v200_v52, %v189_v56  ;;  %v1421_v16 = vstv %s1371_s17  ;;  %841 = vst.msk [vmem:[%s2276_s3 + $0x68] sm:$0xff] %vm148_vm0, %v832_v54  ;;  %v1431_v28 = vstv %s1381_s20  ;;  %s1839_s17 = sld [smem:[#allocation2 + $0x301]]  ;;  %s2061_s20 = sld [smem:[#allocation2 + $0x382]] }
  0x48   :  { %v227_v17 = vmax.f32 %v218_v58, 0.0  ;;  %v219_v25 = vadd.f32 %v1315_v60, %v208_v59  ;;  %v282_v26 = vmul.f32 %v1081_v3, %v1421_v16  ;;  %v271_v30 = vadd.f32 %v262_v13, %v251_v61 }
  0x49   :  { %842 = vst.msk [vmem:[%s2276_s3 + $0x70] sm:$0xff] %vm148_vm0, %v833_v57  ;;  %v220_v29 = vadd.f32 %v1315_v60, %v209_v10  ;;  %v252_v31 = vmul.f32 %v1410_v12, %v1076_v2  ;;  %v263_v34 = vmul.f32 %v1086_v4, %v1413_v51  ;;  %v283_v37 = vmul.f32 %v1091_v5, %v1421_v16 }
  0x4a   :  { %v834_v18 = vadd.f32 -0.234, %v227_v17  ;;  %v228_v35 = vmax.f32 %v219_v25, 0.0  ;;  %v253_v39 = vmul.f32 %v1410_v12, %v1098_v7  ;;  %v291_v41 = vadd.f32 %v282_v26, %v271_v30 }
  0x4b   :  { %v229_v40 = vmax.f32 %v220_v29, 0.0  ;;  %v272_v42 = vadd.f32 %v263_v34, %v252_v31  ;;  %v264_v60 = vmul.f32 %v1103_v8, %v1413_v51  ;;  %v284_v45 = vmul.f32 %v1108_v9, %v1421_v16 }
  0x4c   :  { %843 = vst.msk [vmem:[%s2276_s3 + $0x78] sm:$0xff] %vm148_vm0, %v834_v18  ;;  %v835_v44 = vadd.f32 -0.234, %v228_v35  ;;  %v254_v46 = vmul.f32 %v1410_v12, %v1121_v14  ;;  %v265_v47 = vmul.f32 %v1126_v15, %v1413_v51  ;;  %v302_v50 = vadd.f32 %v1431_v28, %v291_v41 }
  0x4d   :  { %v836_v49 = vadd.f32 -0.234, %v229_v40  ;;  %v292_v6 = vadd.f32 %v283_v37, %v272_v42  ;;  %v273_v11 = vadd.f32 %v264_v60, %v253_v39  ;;  %v285_v55 = vmul.f32 %v1139_v20, %v1421_v16 }
  0x4e   :  { %844 = vst.msk [vmem:[%s2276_s3 + $0x80] sm:$0xff] %vm148_vm0, %v835_v44  ;;  %v274_v52 = vadd.f32 %v265_v47, %v254_v46  ;;  %v255_v56 = vmul.f32 %v1410_v12, %v1144_v21  ;;  %v266_v54 = vmul.f32 %v1149_v22, %v1413_v51  ;;  %v311_v58 = vmax.f32 %v302_v50, 0.0 }
  0x4f   :  { %845 = vst.msk [vmem:[%s2276_s3 + $0x88] sm:$0x3] %vm157_vm1, %v836_v49  ;;  %v303_v59 = vadd.f32 %v1431_v28, %v292_v6  ;;  %v293_v61 = vadd.f32 %v284_v45, %v273_v11  ;;  %v286_v57 = vmul.f32 %v1162_v27, %v1421_v16  ;;  %v256_v17 = vmul.f32 %v1410_v12, %v1171_v32 }
  0x50   :  { %v294_v10 = vadd.f32 %v285_v55, %v274_v52  ;;  %v275_v13 = vadd.f32 %v266_v54, %v255_v56  ;;  %v267_v25 = vmul.f32 %v1176_v33, %v1413_v51  ;;  %v850_v26 = vadd.f32 -0.234, %v311_v58 }
  0x51   :  { %v312_v29 = vmax.f32 %v303_v59, 0.0  ;;  %v304_v30 = vadd.f32 %v1431_v28, %v293_v61  ;;  %v287_v31 = vmul.f32 %v1187_v38, %v1421_v16  ;;  %v257_v37 = vmul.f32 %v1410_v12, %v1194_v43 }
  0x52   :  { %v305_v34 = vadd.f32 %v1431_v28, %v294_v10  ;;  %v295_v18 = vadd.f32 %v286_v57, %v275_v13  ;;  %v276_v35 = vadd.f32 %v267_v25, %v256_v17  ;;  %859 = vst.msk [vmem:[%s2276_s3 + $0x90] sm:$0xff] %vm148_vm0, %v850_v26  ;;  %v268_v41 = vmul.f32 %v1203_v48, %v1413_v51 }
  0x53   :  { %v851_v39 = vadd.f32 -0.234, %v312_v29  ;;  %v313_v40 = vmax.f32 %v304_v30, 0.0  ;;  %v288_v42 = vmul.f32 %v1212_v53, %v1421_v16  ;;  %v258_v46 = vmul.f32 %v1410_v12, %v1229_v62 }
  0x54   :  { %v314_v60 = vmax.f32 %v305_v34, 0.0  ;;  %v306_v44 = vadd.f32 %v1431_v28, %v295_v18  ;;  %v296_v45 = vadd.f32 %v287_v31, %v276_v35  ;;  %v277_v49 = vadd.f32 %v268_v41, %v257_v37 }
  0x55   :  { %860 = vst.msk [vmem:[%s2276_s3 + $0x98] sm:$0xff] %vm148_vm0, %v851_v39  ;;  %v852_v47 = vadd.f32 -0.234, %v313_v40  ;;  %v269_v50 = vmul.f32 %v1234_v63, %v1413_v51  ;;  %v289_v6 = vmul.f32 %v1244_v19, %v1421_v16  ;;  %v259_v56 = vmul.f32 %v1410_v12, %v1249_v23 }
  0x56   :  { %v853_v11 = vadd.f32 -0.234, %v314_v60  ;;  %v315_v52 = vmax.f32 %v306_v44, 0.0  ;;  %v307_v55 = vadd.f32 %v1431_v28, %v296_v45  ;;  %v297_v54 = vadd.f32 %v288_v42, %v277_v49 }
  0x57   :  { %861 = vst.msk [vmem:[%s2276_s3 + $0xa0] sm:$0xff] %vm148_vm0, %v852_v47  ;;  %v278_v58 = vadd.f32 %v269_v50, %v258_v46  ;;  %v270_v59 = vmul.f32 %v1254_v24, %v1413_v51  ;;  %v290_v61 = vmul.f32 %v1262_v36, %v1421_v16  ;;  %v1529_v10 = vstv %s1480_s8 }
  0x58   :  { %862 = vst.msk [vmem:[%s2276_s3 + $0xa8] sm:$0xff] %vm148_vm0, %v853_v11  ;;  %v854_v12 = vadd.f32 -0.234, %v315_v52  ;;  %v316_v57 = vmax.f32 %v307_v55, 0.0  ;;  %v1532_v13 = vstv %s1482_s9  ;;  %v308_v17 = vadd.f32 %v1431_v28, %v297_v54 }
  0x59   :  { %v298_v25 = vadd.f32 %v289_v6, %v278_v58  ;;  %v279_v26 = vadd.f32 %v270_v59, %v259_v56  ;;  %v341_v51 = vmul.f32 %v1529_v10, %v1066_v0  ;;  %v352_v29 = vmul.f32 %v1071_v1, %v1532_v13 }
  0x5a   :  { %863 = vst.msk [vmem:[%s2276_s3 + $0xb0] sm:$0xff] %vm148_vm0, %v854_v12  ;;  %v855_v16 = vadd.f32 -0.234, %v316_v57  ;;  %v1544_v30 = vstv %s1490_s10  ;;  %v1547_v31 = vstv %s1492_s11  ;;  %v317_v34 = vmax.f32 %v308_v17, 0.0 }
  0x5b   :  { %v309_v18 = vadd.f32 %v1431_v28, %v298_v25  ;;  %v299_v35 = vadd.f32 %v290_v61, %v279_v26  ;;  %v372_v37 = vmul.f32 %v1081_v3, %v1544_v30  ;;  %v361_v39 = vadd.f32 %v352_v29, %v341_v51 }
  0x5c   :  { %864 = vst.msk [vmem:[%s2276_s3 + $0xb8] sm:$0xff] %vm148_vm0, %v855_v16  ;;  %v342_v40 = vmul.f32 %v1529_v10, %v1076_v2  ;;  %v353_v41 = vmul.f32 %v1086_v4, %v1532_v13  ;;  %v373_v42 = vmul.f32 %v1091_v5, %v1544_v30  ;;  %v856_v60 = vadd.f32 -0.234, %v317_v34 }
  0x5d   :  { %v318_v44 = vmax.f32 %v309_v18, 0.0  ;;  %v310_v45 = vadd.f32 %v1431_v28, %v299_v35  ;;  %v343_v46 = vmul.f32 %v1529_v10, %v1098_v7  ;;  %v381_v47 = vadd.f32 %v372_v37, %v361_v39 }
  0x5e   :  { %v362_v49 = vadd.f32 %v353_v41, %v342_v40  ;;  %v354_v50 = vmul.f32 %v1103_v8, %v1532_v13  ;;  %v374_v6 = vmul.f32 %v1108_v9, %v1544_v30  ;;  %865 = vst.msk [vmem:[%s2276_s3 + $0xc0] sm:$0xff] %vm148_vm0, %v856_v60  ;;  %v344_v28 = vmul.f32 %v1529_v10, %v1121_v14 }
  0x5f   :  { %v857_v11 = vadd.f32 -0.234, %v318_v44  ;;  %v319_v52 = vmax.f32 %v310_v45, 0.0  ;;  %v355_v55 = vmul.f32 %v1126_v15, %v1532_v13  ;;  %v392_v56 = vadd.f32 %v1547_v31, %v381_v47 }
  0x60   :  { %v382_v54 = vadd.f32 %v373_v42, %v362_v49  ;;  %v363_v58 = vadd.f32 %v354_v50, %v343_v46  ;;  %v375_v59 = vmul.f32 %v1139_v20, %v1544_v30  ;;  %v345_v57 = vmul.f32 %v1529_v10, %v1144_v21 }
  0x61   :  { %866 = vst.msk [vmem:[%s2276_s3 + $0xc8] sm:$0xff] %vm148_vm0, %v857_v11  ;;  %v858_v61 = vadd.f32 -0.234, %v319_v52  ;;  %v364_v12 = vadd.f32 %v355_v55, %v344_v28  ;;  %v356_v17 = vmul.f32 %v1149_v22, %v1532_v13  ;;  %v401_v25 = vmax.f32 %v392_v56, 0.0 }
  0x62   :  { %v393_v26 = vadd.f32 %v1547_v31, %v382_v54  ;;  %v383_v51 = vadd.f32 %v374_v6, %v363_v58  ;;  %v376_v16 = vmul.f32 %v1162_v27, %v1544_v30  ;;  %v346_v18 = vmul.f32 %v1529_v10, %v1171_v32 }
  0x63   :  { %867 = vst.msk [vmem:[%s2276_s3 + $0xd0] sm:$0x3] %vm157_vm1, %v858_v61  ;;  %v384_v29 = vadd.f32 %v375_v59, %v364_v12  ;;  %v365_v34 = vadd.f32 %v356_v17, %v345_v57  ;;  %v357_v35 = vmul.f32 %v1176_v33, %v1532_v13  ;;  %v872_v37 = vadd.f32 -0.234, %v401_v25 }
  0x64   :  { %v402_v39 = vmax.f32 %v393_v26, 0.0  ;;  %v394_v40 = vadd.f32 %v1547_v31, %v383_v51  ;;  %v377_v41 = vmul.f32 %v1187_v38, %v1544_v30  ;;  %v347_v45 = vmul.f32 %v1529_v10, %v1194_v43 }
  0x65   :  { %v395_v42 = vadd.f32 %v1547_v31, %v384_v29  ;;  %v385_v60 = vadd.f32 %v376_v16, %v365_v34  ;;  %v366_v44 = vadd.f32 %v357_v35, %v346_v18  ;;  %881 = vst.msk [vmem:[%s2276_s3 + $0xd8] sm:$0xff] %vm148_vm0, %v872_v37  ;;  %v358_v49 = vmul.f32 %v1203_v48, %v1532_v13 }
  0x66   :  { %v873_v46 = vadd.f32 -0.234, %v402_v39  ;;  %v403_v47 = vmax.f32 %v394_v40, 0.0  ;;  %v378_v50 = vmul.f32 %v1212_v53, %v1544_v30  ;;  %v348_v28 = vmul.f32 %v1529_v10, %v1229_v62 }
  0x67   :  { %v404_v6 = vmax.f32 %v395_v42, 0.0  ;;  %v396_v11 = vadd.f32 %v1547_v31, %v385_v60  ;;  %v386_v52 = vadd.f32 %v377_v41, %v366_v44  ;;  %v367_v56 = vadd.f32 %v358_v49, %v347_v45 }
  0x68   :  { %882 = vst.msk [vmem:[%s2276_s3 + $0xe0] sm:$0xff] %vm148_vm0, %v873_v46  ;;  %v874_v55 = vadd.f32 -0.234, %v403_v47  ;;  %v359_v54 = vmul.f32 %v1234_v63, %v1532_v13  ;;  %v379_v58 = vmul.f32 %v1244_v19, %v1544_v30  ;;  %v349_v57 = vmul.f32 %v1529_v10, %v1249_v23 }
  0x69   :  { %v875_v59 = vadd.f32 -0.234, %v404_v6  ;;  %v405_v61 = vmax.f32 %v396_v11, 0.0  ;;  %v397_v12 = vadd.f32 %v1547_v31, %v386_v52  ;;  %v387_v17 = vadd.f32 %v378_v50, %v367_v56 }
  0x6a   :  { %883 = vst.msk [vmem:[%s2276_s3 + $0xe8] sm:$0xff] %vm148_vm0, %v874_v55  ;;  %v368_v25 = vadd.f32 %v359_v54, %v348_v28  ;;  %v360_v26 = vmul.f32 %v1254_v24, %v1532_v13  ;;  %v380_v51 = vmul.f32 %v1262_v36, %v1544_v30  ;;  %v1648_v29 = vstv %s1599_s28 }
  0x6b   :  { %884 = vst.msk [vmem:[%s2276_s3 + $0xf0] sm:$0xff] %vm148_vm0, %v875_v59  ;;  %v876_v10 = vadd.f32 -0.234, %v405_v61  ;;  %v406_v16 = vmax.f32 %v397_v12, 0.0  ;;  %v1651_v34 = vstv %s1601_s29  ;;  %v398_v18 = vadd.f32 %v1547_v31, %v387_v17 }
  0x6c   :  { %v388_v35 = vadd.f32 %v379_v58, %v368_v25  ;;  %v369_v37 = vadd.f32 %v360_v26, %v349_v57  ;;  %v431_v13 = vmul.f32 %v1648_v29, %v1066_v0  ;;  %v442_v39 = vmul.f32 %v1071_v1, %v1651_v34 }
  0x6d   :  { %885 = vst.msk [vmem:[%s2276_s3 + $0xf8] sm:$0xff] %vm148_vm0, %v876_v10  ;;  %v877_v30 = vadd.f32 -0.234, %v406_v16  ;;  %v1663_v40 = vstv %s1609_s30  ;;  %v1666_v41 = vstv %s1611_s4  ;;  %v407_v42 = vmax.f32 %v398_v18, 0.0 }
  0x6e   :  { %v399_v60 = vadd.f32 %v1547_v31, %v388_v35  ;;  %v389_v44 = vadd.f32 %v380_v51, %v369_v37  ;;  %v462_v45 = vmul.f32 %v1081_v3, %v1663_v40  ;;  %v451_v46 = vadd.f32 %v442_v39, %v431_v13 }
  0x6f   :  { %886 = vst.msk [vmem:[%s2276_s3 + $0x100] sm:$0xff] %vm148_vm0, %v877_v30  ;;  %v432_v47 = vmul.f32 %v1648_v29, %v1076_v2  ;;  %v443_v49 = vmul.f32 %v1086_v4, %v1651_v34  ;;  %v463_v50 = vmul.f32 %v1091_v5, %v1663_v40  ;;  %v878_v6 = vadd.f32 -0.234, %v407_v42 }
  0x70   :  { %v408_v11 = vmax.f32 %v399_v60, 0.0  ;;  %v400_v52 = vadd.f32 %v1547_v31, %v389_v44  ;;  %v433_v28 = vmul.f32 %v1648_v29, %v1098_v7  ;;  %v471_v55 = vadd.f32 %v462_v45, %v451_v46 }
  0x71   :  { %v452_v56 = vadd.f32 %v443_v49, %v432_v47  ;;  %v444_v54 = vmul.f32 %v1103_v8, %v1651_v34  ;;  %v464_v58 = vmul.f32 %v1108_v9, %v1663_v40  ;;  %887 = vst.msk [vmem:[%s2276_s3 + $0x108] sm:$0xff] %vm148_vm0, %v878_v6  ;;  %v434_v31 = vmul.f32 %v1648_v29, %v1121_v14 }
  0x72   :  { %v879_v59 = vadd.f32 -0.234, %v408_v11  ;;  %v409_v61 = vmax.f32 %v400_v52, 0.0  ;;  %v445_v12 = vmul.f32 %v1126_v15, %v1651_v34  ;;  %v482_v57 = vadd.f32 %v1666_v41, %v471_v55 }
  0x73   :  { %v472_v17 = vadd.f32 %v463_v50, %v452_v56  ;;  %v453_v25 = vadd.f32 %v444_v54, %v433_v28  ;;  %v465_v26 = vmul.f32 %v1139_v20, %v1663_v40  ;;  %v435_v16 = vmul.f32 %v1648_v29, %v1144_v21 }
  0x74   :  { %888 = vst.msk [vmem:[%s2276_s3 + $0x110] sm:$0xff] %vm148_vm0, %v879_v59  ;;  %v880_v51 = vadd.f32 -0.234, %v409_v61  ;;  %v454_v10 = vadd.f32 %v445_v12, %v434_v31  ;;  %v446_v18 = vmul.f32 %v1149_v22, %v1651_v34  ;;  %v491_v35 = vmax.f32 %v482_v57, 0.0 }
  0x75   :  { %v483_v37 = vadd.f32 %v1666_v41, %v472_v17  ;;  %v473_v13 = vadd.f32 %v464_v58, %v453_v25  ;;  %v466_v30 = vmul.f32 %v1162_v27, %v1663_v40  ;;  %v436_v60 = vmul.f32 %v1648_v29, %v1171_v32 }
  0x76   :  { %889 = vst.msk [vmem:[%s2276_s3 + $0x118] sm:$0x3] %vm157_vm1, %v880_v51  ;;  %v474_v39 = vadd.f32 %v465_v26, %v454_v10  ;;  %v455_v42 = vadd.f32 %v446_v18, %v435_v16  ;;  %v447_v44 = vmul.f32 %v1176_v33, %v1651_v34  ;;  %v894_v45 = vadd.f32 -0.234, %v491_v35 }
  0x77   :  { %v492_v46 = vmax.f32 %v483_v37, 0.0  ;;  %v484_v47 = vadd.f32 %v1666_v41, %v473_v13  ;;  %v467_v49 = vmul.f32 %v1187_v38, %v1663_v40  ;;  %v437_v52 = vmul.f32 %v1648_v29, %v1194_v43 }
  0x78   :  { %v485_v50 = vadd.f32 %v1666_v41, %v474_v39  ;;  %v475_v6 = vadd.f32 %v466_v30, %v455_v42  ;;  %v456_v11 = vadd.f32 %v447_v44, %v436_v60  ;;  %903 = vst.msk [vmem:[%s2276_s3 + $0x120] sm:$0xff] %vm148_vm0, %v894_v45  ;;  %v448_v56 = vmul.f32 %v1203_v48, %v1651_v34 }
  0x79   :  { %v895_v28 = vadd.f32 -0.234, %v492_v46  ;;  %v493_v55 = vmax.f32 %v484_v47, 0.0  ;;  %v468_v54 = vmul.f32 %v1212_v53, %v1663_v40  ;;  %v438_v31 = vmul.f32 %v1648_v29, %v1229_v62 }
  0x7a   :  { %v494_v58 = vmax.f32 %v485_v50, 0.0  ;;  %v486_v59 = vadd.f32 %v1666_v41, %v475_v6  ;;  %v476_v61 = vadd.f32 %v467_v49, %v456_v11  ;;  %v457_v57 = vadd.f32 %v448_v56, %v437_v52 }
  0x7b   :  { %904 = vst.msk [vmem:[%s2276_s3 + $0x128] sm:$0xff] %vm148_vm0, %v895_v28  ;;  %v896_v12 = vadd.f32 -0.234, %v493_v55  ;;  %v449_v17 = vmul.f32 %v1234_v63, %v1651_v34  ;;  %v469_v25 = vmul.f32 %v1244_v19, %v1663_v40  ;;  %v439_v16 = vmul.f32 %v1648_v29, %v1249_v23 }
  0x7c   :  { %v897_v26 = vadd.f32 -0.234, %v494_v58  ;;  %v495_v51 = vmax.f32 %v486_v59, 0.0  ;;  %v487_v10 = vadd.f32 %v1666_v41, %v476_v61  ;;  %v477_v18 = vadd.f32 %v468_v54, %v457_v57 }
  0x7d   :  { %905 = vst.msk [vmem:[%s2276_s3 + $0x130] sm:$0xff] %vm148_vm0, %v896_v12  ;;  %v458_v35 = vadd.f32 %v449_v17, %v438_v31  ;;  %v450_v37 = vmul.f32 %v1254_v24, %v1651_v34  ;;  %v470_v13 = vmul.f32 %v1262_v36, %v1663_v40  ;;  %v1767_v39 = vstv %s1718_s21 }
  0x7e   :  { %906 = vst.msk [vmem:[%s2276_s3 + $0x138] sm:$0xff] %vm148_vm0, %v897_v26  ;;  %v898_v29 = vadd.f32 -0.234, %v495_v51  ;;  %v496_v30 = vmax.f32 %v487_v10, 0.0  ;;  %v1770_v42 = vstv %s1720_s22  ;;  %v488_v60 = vadd.f32 %v1666_v41, %v477_v18 }
  0x7f   :  { %v478_v44 = vadd.f32 %v469_v25, %v458_v35  ;;  %v459_v45 = vadd.f32 %v450_v37, %v439_v16  ;;  %v521_v34 = vmul.f32 %v1767_v39, %v1066_v0  ;;  %v532_v46 = vmul.f32 %v1071_v1, %v1770_v42 }
  0x80   :  { %907 = vst.msk [vmem:[%s2276_s3 + $0x140] sm:$0xff] %vm148_vm0, %v898_v29  ;;  %v899_v40 = vadd.f32 -0.234, %v496_v30  ;;  %v1782_v47 = vstv %s1728_s23  ;;  %v1785_v49 = vstv %s1730_s24  ;;  %v497_v50 = vmax.f32 %v488_v60, 0.0 }
  0x81   :  { %v489_v6 = vadd.f32 %v1666_v41, %v478_v44  ;;  %v479_v11 = vadd.f32 %v470_v13, %v459_v45  ;;  %v552_v0 = vmul.f32 %v1081_v3, %v1782_v47  ;;  %v541_v52 = vadd.f32 %v532_v46, %v521_v34 }
  0x82   :  { %908 = vst.msk [vmem:[%s2276_s3 + $0x148] sm:$0xff] %vm148_vm0, %v899_v40  ;;  %v522_v1 = vmul.f32 %v1767_v39, %v1076_v2  ;;  %v533_v28 = vmul.f32 %v1086_v4, %v1770_v42  ;;  %v553_v55 = vmul.f32 %v1091_v5, %v1782_v47  ;;  %v900_v56 = vadd.f32 -0.234, %v497_v50 }
  0x83   :  { %v498_v54 = vmax.f32 %v489_v6, 0.0  ;;  %v490_v58 = vadd.f32 %v1666_v41, %v479_v11  ;;  %v523_v3 = vmul.f32 %v1767_v39, %v1098_v7  ;;  %v561_v59 = vadd.f32 %v552_v0, %v541_v52 }
  0x84   :  { %v542_v61 = vadd.f32 %v533_v28, %v522_v1  ;;  %v534_v31 = vmul.f32 %v1103_v8, %v1770_v42  ;;  %v554_v2 = vmul.f32 %v1108_v9, %v1782_v47  ;;  %909 = vst.msk [vmem:[%s2276_s3 + $0x150] sm:$0xff] %vm148_vm0, %v900_v56  ;;  %v524_v41 = vmul.f32 %v1767_v39, %v1121_v14 }
  0x85   :  { %v901_v4 = vadd.f32 -0.234, %v498_v54  ;;  %v499_v5 = vmax.f32 %v490_v58, 0.0  ;;  %v535_v7 = vmul.f32 %v1126_v15, %v1770_v42  ;;  %v572_v12 = vadd.f32 %v1785_v49, %v561_v59 }
  0x86   :  { %v562_v57 = vadd.f32 %v553_v55, %v542_v61  ;;  %v543_v8 = vadd.f32 %v534_v31, %v523_v3  ;;  %v555_v9 = vmul.f32 %v1139_v20, %v1782_v47  ;;  %v525_v14 = vmul.f32 %v1767_v39, %v1144_v21  ;;  %v1906_v3 = vld [vmem:[%s2275_s2 + $0x48] sm:$0xff] }
  0x87   :  { %910 = vst.msk [vmem:[%s2276_s3 + $0x158] sm:$0xff] %vm148_vm0, %v901_v4  ;;  %v902_v17 = vadd.f32 -0.234, %v499_v5  ;;  %v544_v25 = vadd.f32 %v535_v7, %v524_v41  ;;  %v536_v15 = vmul.f32 %v1149_v22, %v1770_v42  ;;  %v581_v26 = vmax.f32 %v572_v12, 0.0  ;;  %v1920_v41 = vld [vmem:[%s2275_s2 + $0x90] sm:$0xff] }
  0x88   :  { %v573_v51 = vadd.f32 %v1785_v49, %v562_v57  ;;  %v563_v10 = vadd.f32 %v554_v2, %v543_v8  ;;  %v556_v20 = vmul.f32 %v1162_v27, %v1782_v47  ;;  %v526_v21 = vmul.f32 %v1767_v39, %v1171_v32  ;;  %v1931_v57 = vld [vmem:[%s2275_s2 + $0x8] sm:$0xff] }
  0x89   :  { %911 = vst.msk [vmem:[%s2276_s3 + $0x160] sm:$0x3] %vm157_vm1, %v902_v17  ;;  %v564_v16 = vadd.f32 %v555_v9, %v544_v25  ;;  %v545_v18 = vadd.f32 %v536_v15, %v525_v14  ;;  %v537_v22 = vmul.f32 %v1176_v33, %v1770_v42  ;;  %v916_v35 = vadd.f32 -0.234, %v581_v26  ;;  %v1938_v9 = vld [vmem:[%s2275_s2 + $0x50] sm:$0xff]  ;;  %v1945_v25 = vld [vmem:[%s2275_s2 + $0x98] sm:$0xff] }
  0x8a   :  { %v582_v37 = vmax.f32 %v573_v51, 0.0  ;;  %v574_v27 = vadd.f32 %v1785_v49, %v563_v10  ;;  %v557_v13 = vmul.f32 %v1187_v38, %v1782_v47  ;;  %v527_v32 = vmul.f32 %v1767_v39, %v1194_v43  ;;  %v1953_v10 = vld [vmem:[%s2275_s2 + $0x10] sm:$0xff] }
  0x8b   :  { %v575_v29 = vadd.f32 %v1785_v49, %v564_v16  ;;  %v565_v30 = vadd.f32 %v556_v20, %v545_v18  ;;  %v546_v60 = vadd.f32 %v537_v22, %v526_v21  ;;  %925 = vst.msk [vmem:[%s2276_s3 + $0x168] sm:$0xff] %vm148_vm0, %v916_v35  ;;  %v538_v38 = vmul.f32 %v1203_v48, %v1770_v42  ;;  %v1960_v21 = vld [vmem:[%s2275_s2 + $0x58] sm:$0xff] }
  0x8c   :  { %v917_v33 = vadd.f32 -0.234, %v582_v37  ;;  %v583_v44 = vmax.f32 %v574_v27, 0.0  ;;  %v558_v45 = vmul.f32 %v1212_v53, %v1782_v47  ;;  %v528_v46 = vmul.f32 %v1767_v39, %v1229_v62 }
  0x8d   :  { %v584_v34 = vmax.f32 %v575_v29, 0.0  ;;  %v576_v43 = vadd.f32 %v1785_v49, %v565_v30  ;;  %v566_v40 = vadd.f32 %v557_v13, %v546_v60  ;;  %v547_v6 = vadd.f32 %v538_v38, %v527_v32  ;;  %v1978_v13 = vld [vmem:[%s2275_s2 + $0x18] sm:$0xff]  ;;  %v1985_v30 = vld [vmem:[%s2275_s2 + $0x60] sm:$0xff]  ;;  %v1993_v38 = vld [vmem:[%s2275_s2 + $0xa8] sm:$0xff] }
  0x8e   :  { %926 = vst.msk [vmem:[%s2276_s3 + $0x170] sm:$0xff] %vm148_vm0, %v917_v33  ;;  %v918_v50 = vadd.f32 -0.234, %v583_v44  ;;  %v539_v48 = vmul.f32 %v1234_v63, %v1770_v42  ;;  %v559_v53 = vmul.f32 %v1244_v19, %v1782_v47  ;;  %v529_v62 = vmul.f32 %v1767_v39, %v1249_v23 }
  0x8f   :  { %v919_v11 = vadd.f32 -0.234, %v584_v34  ;;  %v585_v0 = vmax.f32 %v576_v43, 0.0  ;;  %v577_v52 = vadd.f32 %v1785_v49, %v566_v40  ;;  %v567_v1 = vadd.f32 %v558_v45, %v547_v6  ;;  %v2004_v40 = vld [vmem:[%s2275_s2 + $0x20] sm:$0xff] }
  0x90   :  { %927 = vst.msk [vmem:[%s2276_s3 + $0x178] sm:$0xff] %vm148_vm0, %v918_v50  ;;  %v548_v28 = vadd.f32 %v539_v48, %v528_v46  ;;  %v540_v63 = vmul.f32 %v1254_v24, %v1770_v42  ;;  %v560_v19 = vmul.f32 %v1262_v36, %v1782_v47  ;;  %v1886_v55 = vstv %s1837_s16  ;;  %v1895_v36 = vld [vmem:[%s2275_s2] sm:$0xff]  ;;  %v2011_v50 = vld [vmem:[%s2275_s2 + $0x68] sm:$0xff] }
  0x91   :  { %928 = vst.msk [vmem:[%s2276_s3 + $0x180] sm:$0xff] %vm148_vm0, %v919_v11  ;;  %v920_v23 = vadd.f32 -0.234, %v585_v0  ;;  %v586_v39 = vmax.f32 %v577_v52, 0.0  ;;  %v1889_v56 = vstv %s1839_s17  ;;  %v578_v54 = vadd.f32 %v1785_v49, %v567_v1  ;;  %v2019_v0 = vld [vmem:[%s2275_s2 + $0xb0] sm:$0xff] }
  0x92   :  { %v568_v58 = vadd.f32 %v559_v53, %v548_v28  ;;  %v549_v24 = vadd.f32 %v540_v63, %v529_v62  ;;  %v611_v42 = vmul.f32 %v1895_v36, %v1886_v55  ;;  %v622_v59 = vmul.f32 %v1906_v3, %v1889_v56  ;;  %v2030_v28 = vld [vmem:[%s2275_s2 + $0x28] sm:$0xff] }
  0x93   :  { %929 = vst.msk [vmem:[%s2276_s3 + $0x188] sm:$0xff] %vm148_vm0, %v920_v23  ;;  %v921_v47 = vadd.f32 -0.234, %v586_v39  ;;  %v1911_v61 = vstv %s1847_s18  ;;  %v1914_v31 = vstv %s1849_s19  ;;  %v587_v2 = vmax.f32 %v578_v54, 0.0 }
  0x94   :  { %v579_v4 = vadd.f32 %v1785_v49, %v568_v58  ;;  %v569_v5 = vadd.f32 %v560_v19, %v549_v24  ;;  %v642_v7 = vmul.f32 %v1920_v41, %v1911_v61  ;;  %v631_v12 = vadd.f32 %v622_v59, %v611_v42  ;;  %v2037_v19 = vld [vmem:[%s2275_s2 + $0x70] sm:$0xff]  ;;  %v2049_v24 = vld [vmem:[%s2275_s2 + $0xb8] sm:$0xff] }
  0x95   :  { %930 = vst.msk [vmem:[%s2276_s3 + $0x190] sm:$0xff] %vm148_vm0, %v921_v47  ;;  %v612_v8 = vmul.f32 %v1931_v57, %v1886_v55  ;;  %v623_v17 = vmul.f32 %v1938_v9, %v1889_v56  ;;  %v643_v14 = vmul.f32 %v1945_v25, %v1911_v61  ;;  %v922_v15 = vadd.f32 -0.234, %v587_v2 }
  0x96   :  { %v588_v26 = vmax.f32 %v579_v4, 0.0  ;;  %v580_v51 = vadd.f32 %v1785_v49, %v569_v5  ;;  %v613_v20 = vmul.f32 %v1953_v10, %v1886_v55  ;;  %v651_v16 = vadd.f32 %v642_v7, %v631_v12  ;;  %v1967_v49 = vld [vmem:[%s2275_s2 + $0xa0] sm:$0xff]  ;;  %v2057_v4 = vld [vmem:[%s2275_s2 + $0x30] sm:$0xff] }
  0x97   :  { %v632_v18 = vadd.f32 %v623_v17, %v612_v8  ;;  %v624_v22 = vmul.f32 %v1960_v21, %v1889_v56  ;;  %v644_v35 = vmul.f32 %v1967_v49, %v1911_v61  ;;  %931 = vst.msk [vmem:[%s2276_s3 + $0x198] sm:$0xff] %vm148_vm0, %v922_v15  ;;  %v614_v29 = vmul.f32 %v1978_v13, %v1886_v55  ;;  %v2072_v8 = vld [vmem:[%s2275_s2 + $0x78] sm:$0xff] }
  0x98   :  { %v923_v37 = vadd.f32 -0.234, %v588_v26  ;;  %v589_v27 = vmax.f32 %v580_v51, 0.0  ;;  %v625_v60 = vmul.f32 %v1985_v30, %v1889_v56  ;;  %v662_v32 = vadd.f32 %v1914_v31, %v651_v16  ;;  %v2087_v16 = vld [vmem:[%s2275_s2 + $0x38] sm:$0xff] }
  0x99   :  { %v652_v33 = vadd.f32 %v643_v14, %v632_v18  ;;  %v633_v44 = vadd.f32 %v624_v22, %v613_v20  ;;  %v645_v45 = vmul.f32 %v1993_v38, %v1911_v61  ;;  %v615_v46 = vmul.f32 %v2004_v40, %v1886_v55  ;;  %v2079_v14 = vld [vmem:[%s2275_s2 + $0xc0] sm:$0xff] }
  0x9a   :  { %932 = vst.msk [vmem:[%s2276_s3 + $0x1a0] sm:$0xff] %vm148_vm0, %v923_v37  ;;  %v924_v34 = vadd.f32 -0.234, %v589_v27  ;;  %v634_v43 = vadd.f32 %v625_v60, %v614_v29  ;;  %v626_v6 = vmul.f32 %v2011_v50, %v1889_v56  ;;  %v671_v48 = vmax.f32 %v662_v32, 0.0  ;;  %v2098_v37 = vld [vmem:[%s2275_s2 + $0x80] sm:$0xff]  ;;  %v2105_v29 = vld [vmem:[%s2275_s2 + $0xc8] sm:$0xff] }
  0x9b   :  { %v663_v53 = vadd.f32 %v1914_v31, %v652_v33  ;;  %v653_v11 = vadd.f32 %v644_v35, %v633_v44  ;;  %v646_v52 = vmul.f32 %v2019_v0, %v1911_v61  ;;  %v616_v63 = vmul.f32 %v2030_v28, %v1886_v55 }
  0x9c   :  { %933 = vst.msk [vmem:[%s2276_s3 + $0x1a8] sm:$0x3] %vm157_vm1, %v924_v34  ;;  %v654_v62 = vadd.f32 %v645_v45, %v634_v43  ;;  %v635_v1 = vadd.f32 %v626_v6, %v615_v46  ;;  %v627_v23 = vmul.f32 %v2037_v19, %v1889_v56  ;;  %v938_v39 = vadd.f32 -0.234, %v671_v48  ;;  %v2113_v45 = vld [vmem:[%s2275_s2 + $0x40] sm:$0x3] }
  0x9d   :  { %v672_v54 = vmax.f32 %v663_v53, 0.0  ;;  %v664_v58 = vadd.f32 %v1914_v31, %v653_v11  ;;  %v647_v42 = vmul.f32 %v2049_v24, %v1911_v61  ;;  %v617_v5 = vmul.f32 %v2057_v4, %v1886_v55  ;;  %v2124_v6 = vld [vmem:[%s2275_s2 + $0x88] sm:$0x3] }
  0x9e   :  { %v665_v47 = vadd.f32 %v1914_v31, %v654_v62  ;;  %v655_v59 = vadd.f32 %v646_v52, %v635_v1  ;;  %v636_v2 = vadd.f32 %v627_v23, %v616_v63  ;;  %947 = vst.msk [vmem:[%s2276_s3 + $0x1b0] sm:$0xff] %vm148_vm0, %v938_v39  ;;  %v628_v17 = vmul.f32 %v2072_v8, %v1889_v56 }
  0x9f   :  { %v939_v7 = vadd.f32 -0.234, %v672_v54  ;;  %v673_v12 = vmax.f32 %v664_v58, 0.0  ;;  %v648_v15 = vmul.f32 %v2079_v14, %v1911_v61  ;;  %v618_v18 = vmul.f32 %v2087_v16, %v1886_v55 }
  0xa0   :  { %v674_v26 = vmax.f32 %v665_v47, 0.0  ;;  %v666_v51 = vadd.f32 %v1914_v31, %v655_v59  ;;  %v656_v20 = vadd.f32 %v647_v42, %v636_v2  ;;  %v637_v35 = vadd.f32 %v628_v17, %v617_v5 }
  0xa1   :  { %948 = vst.msk [vmem:[%s2276_s3 + $0x1b8] sm:$0xff] %vm148_vm0, %v939_v7  ;;  %v940_v22 = vadd.f32 -0.234, %v673_v12  ;;  %v629_v27 = vmul.f32 %v2098_v37, %v1889_v56  ;;  %v649_v60 = vmul.f32 %v2105_v29, %v1911_v61  ;;  %v619_v34 = vmul.f32 %v2113_v45, %v1886_v55  ;;  %v2131_v55 = vld [vmem:[%s2275_s2 + $0xd0] sm:$0x3] }
  0xa2   :  { %v941_v32 = vadd.f32 -0.234, %v674_v26  ;;  %v675_v33 = vmax.f32 %v666_v51, 0.0  ;;  %v667_v44 = vadd.f32 %v1914_v31, %v656_v20  ;;  %v657_v43 = vadd.f32 %v648_v15, %v637_v35 }
  0xa3   :  { %949 = vst.msk [vmem:[%s2276_s3 + $0x1c0] sm:$0xff] %vm148_vm0, %v940_v22  ;;  %v638_v46 = vadd.f32 %v629_v27, %v618_v18  ;;  %v630_v48 = vmul.f32 %v2124_v6, %v1889_v56  ;;  %v650_v53 = vmul.f32 %v2131_v55, %v1911_v61  ;;  %v2140_v62 = vstv %s2041_s14 }
  0xa4   :  { %950 = vst.msk [vmem:[%s2276_s3 + $0x1c8] sm:$0xff] %vm148_vm0, %v941_v32  ;;  %v942_v11 = vadd.f32 -0.234, %v675_v33  ;;  %v676_v52 = vmax.f32 %v667_v44, 0.0  ;;  %v2143_v1 = vstv %s2043_s15  ;;  %v668_v56 = vadd.f32 %v1914_v31, %v657_v43 }
  0xa5   :  { %v658_v63 = vadd.f32 %v649_v60, %v638_v46  ;;  %v639_v23 = vadd.f32 %v630_v48, %v619_v34  ;;  %v701_v39 = vmul.f32 %v1895_v36, %v2140_v62  ;;  %v712_v54 = vmul.f32 %v1906_v3, %v2143_v1 }
  0xa6   :  { %951 = vst.msk [vmem:[%s2276_s3 + $0x1d0] sm:$0xff] %vm148_vm0, %v942_v11  ;;  %v943_v61 = vadd.f32 -0.234, %v676_v52  ;;  %v2155_v58 = vstv %s2061_s20  ;;  %v2158_v42 = vstv %s2063_s0  ;;  %v677_v47 = vmax.f32 %v668_v56, 0.0 }
  0xa7   :  { %v669_v59 = vadd.f32 %v1914_v31, %v658_v63  ;;  %v659_v2 = vadd.f32 %v650_v53, %v639_v23  ;;  %v732_v36 = vmul.f32 %v1920_v41, %v2155_v58  ;;  %v721_v5 = vadd.f32 %v712_v54, %v701_v39 }
  0xa8   :  { %952 = vst.msk [vmem:[%s2276_s3 + $0x1d8] sm:$0xff] %vm148_vm0, %v943_v61  ;;  %v702_v3 = vmul.f32 %v1931_v57, %v2140_v62  ;;  %v713_v7 = vmul.f32 %v1938_v9, %v2143_v1  ;;  %v733_v12 = vmul.f32 %v1945_v25, %v2155_v58  ;;  %v944_v17 = vadd.f32 -0.234, %v677_v47 }
  0xa9   :  { %v678_v15 = vmax.f32 %v669_v59, 0.0  ;;  %v670_v26 = vadd.f32 %v1914_v31, %v659_v2  ;;  %v703_v41 = vmul.f32 %v1953_v10, %v2140_v62  ;;  %v741_v51 = vadd.f32 %v732_v36, %v721_v5 }
  0xaa   :  { %v722_v20 = vadd.f32 %v713_v7, %v702_v3  ;;  %v714_v18 = vmul.f32 %v1960_v21, %v2143_v1  ;;  %v734_v57 = vmul.f32 %v1967_v49, %v2155_v58  ;;  %953 = vst.msk [vmem:[%s2276_s3 + $0x1e0] sm:$0xff] %vm148_vm0, %v944_v17  ;;  %v704_v31 = vmul.f32 %v1978_v13, %v2140_v62 }
  0xab   :  { %v945_v9 = vadd.f32 -0.234, %v678_v15  ;;  %v679_v25 = vmax.f32 %v670_v26, 0.0  ;;  %v715_v10 = vmul.f32 %v1985_v30, %v2143_v1  ;;  %v752_v22 = vadd.f32 %v2158_v42, %v741_v51 }
  0xac   :  { %v742_v35 = vadd.f32 %v733_v12, %v722_v20  ;;  %v723_v21 = vadd.f32 %v714_v18, %v703_v41  ;;  %v735_v49 = vmul.f32 %v1993_v38, %v2155_v58  ;;  %v705_v13 = vmul.f32 %v2004_v40, %v2140_v62 }
  0xad   :  { %954 = vst.msk [vmem:[%s2276_s3 + $0x1e8] sm:$0xff] %vm148_vm0, %v945_v9  ;;  %v946_v27 = vadd.f32 -0.234, %v679_v25  ;;  %v724_v60 = vadd.f32 %v715_v10, %v704_v31  ;;  %v716_v30 = vmul.f32 %v2011_v50, %v2143_v1  ;;  %v761_v32 = vmax.f32 %v752_v22, 0.0 }
  0xae   :  { %v753_v33 = vadd.f32 %v2158_v42, %v742_v35  ;;  %v743_v44 = vadd.f32 %v734_v57, %v723_v21  ;;  %v736_v38 = vmul.f32 %v2019_v0, %v2155_v58  ;;  %v706_v40 = vmul.f32 %v2030_v28, %v2140_v62 }
  0xaf   :  { %955 = vst.msk [vmem:[%s2276_s3 + $0x1f0] sm:$0x3] %vm157_vm1, %v946_v27  ;;  %v744_v34 = vadd.f32 %v735_v49, %v724_v60  ;;  %v725_v43 = vadd.f32 %v716_v30, %v705_v13  ;;  %v717_v50 = vmul.f32 %v2037_v19, %v2143_v1  ;;  %v960_v46 = vadd.f32 -0.234, %v761_v32 }
  0xb0   :  { %v762_v48 = vmax.f32 %v753_v33, 0.0  ;;  %v754_v53 = vadd.f32 %v2158_v42, %v743_v44  ;;  %v737_v0 = vmul.f32 %v2049_v24, %v2155_v58  ;;  %v707_v63 = vmul.f32 %v2057_v4, %v2140_v62 }
  0xb1   :  { %v755_v11 = vadd.f32 %v2158_v42, %v744_v34  ;;  %v745_v52 = vadd.f32 %v736_v38, %v725_v43  ;;  %v726_v56 = vadd.f32 %v717_v50, %v706_v40  ;;  %969 = vst.msk [vmem:[%s2276_s3 + $0x1f8] sm:$0xff] %vm148_vm0, %v960_v46  ;;  %v718_v23 = vmul.f32 %v2072_v8, %v2143_v1 }
  0xb2   :  { %v961_v28 = vadd.f32 -0.234, %v762_v48  ;;  %v763_v19 = vmax.f32 %v754_v53, 0.0  ;;  %v738_v24 = vmul.f32 %v2079_v14, %v2155_v58  ;;  %v708_v4 = vmul.f32 %v2087_v16, %v2140_v62 }
  0xb3   :  { %v764_v39 = vmax.f32 %v755_v11, 0.0  ;;  %v756_v61 = vadd.f32 %v2158_v42, %v745_v52  ;;  %v746_v54 = vadd.f32 %v737_v0, %v726_v56  ;;  %v727_v59 = vadd.f32 %v718_v23, %v707_v63 }
  0xb4   :  { %970 = vst.msk [vmem:[%s2276_s3 + $0x200] sm:$0xff] %vm148_vm0, %v961_v28  ;;  %v962_v47 = vadd.f32 -0.234, %v763_v19  ;;  %v719_v8 = vmul.f32 %v2098_v37, %v2143_v1  ;;  %v739_v14 = vmul.f32 %v2105_v29, %v2155_v58  ;;  %v709_v16 = vmul.f32 %v2113_v45, %v2140_v62 }
  0xb5   :  { %v963_v2 = vadd.f32 -0.234, %v764_v39  ;;  %v765_v36 = vmax.f32 %v756_v61, 0.0  ;;  %v757_v5 = vadd.f32 %v2158_v42, %v746_v54  ;;  %v747_v3 = vadd.f32 %v738_v24, %v727_v59 }
  0xb6   :  { %971 = vst.msk [vmem:[%s2276_s3 + $0x208] sm:$0xff] %vm148_vm0, %v962_v47  ;;  %v728_v7 = vadd.f32 %v719_v8, %v708_v4  ;;  %v720_v37 = vmul.f32 %v2124_v6, %v2143_v1  ;;  %v740_v29 = vmul.f32 %v2131_v55, %v2155_v58 }
  0xb7   :  { %972 = vst.msk [vmem:[%s2276_s3 + $0x210] sm:$0xff] %vm148_vm0, %v963_v2  ;;  %v964_v12 = vadd.f32 -0.234, %v765_v36  ;;  %v766_v45 = vmax.f32 %v757_v5, 0.0  ;;  %v758_v62 = vadd.f32 %v2158_v42, %v747_v3 }
  0xb8   :  { %v748_v17 = vadd.f32 %v739_v14, %v728_v7  ;;  %v729_v15 = vadd.f32 %v720_v37, %v709_v16 }
  0xb9   :  { %973 = vst.msk [vmem:[%s2276_s3 + $0x218] sm:$0xff] %vm148_vm0, %v964_v12  ;;  %v965_v6 = vadd.f32 -0.234, %v766_v45  ;;  %v767_v1 = vmax.f32 %v758_v62, 0.0 }
  0xba   :  { %v759_v55 = vadd.f32 %v2158_v42, %v748_v17  ;;  %v749_v58 = vadd.f32 %v740_v29, %v729_v15 }
  0xbb   :  { %974 = vst.msk [vmem:[%s2276_s3 + $0x220] sm:$0xff] %vm148_vm0, %v965_v6  ;;  %v966_v26 = vadd.f32 -0.234, %v767_v1 }
  0xbc   :  { %v768_v41 = vmax.f32 %v759_v55, 0.0  ;;  %v760_v51 = vadd.f32 %v2158_v42, %v749_v58 }
  0xbd   :  { %975 = vst.msk [vmem:[%s2276_s3 + $0x228] sm:$0xff] %vm148_vm0, %v966_v26 }
  0xbe   :  { %v967_v20 = vadd.f32 -0.234, %v768_v41  ;;  %v769_v18 = vmax.f32 %v760_v51, 0.0 }
  0xc0   :  { %976 = vst.msk [vmem:[%s2276_s3 + $0x230] sm:$0xff] %vm148_vm0, %v967_v20  ;;  %v968_v57 = vadd.f32 -0.234, %v769_v18 }
  0xc2   :  { %977 = vst.msk [vmem:[%s2276_s3 + $0x238] sm:$0x3] %vm157_vm1, %v968_v57 }
  0xc3   :  { %793 = vsyncpa [#allocation3], 1 }
  0xc4   :  { %794 = vsyncpa [#allocation5], 1 }

</bundles_post_ra>
